<compile_context>
chip_gen: v7x
topology: tpu7x:2x2x1
jax: 0.10.0
libtpu: 0.0.40
codegen_flags: <defaults>
</compile_context>

<pallas_src>
from functools import partial

import jax
import jax.numpy as jnp
from jax.experimental import pallas as pl
from jax.experimental.pallas import tpu as pltpu

IGNORE_INDEX = 255


def _fold128(x, width):
    """(C, width) -> (C, 128) via a halving tree of lane-aligned VALU adds."""
    while width > 128:
        width //= 2
        x = x[:, :width] + x[:, width:]
    return x


def _mcc_stats_kernel(pred_ref, target_ref, out_ref, *,
                      num_classes, chunk, ts, s_len, tiles_per_split,
                      ignore_index, unclipped, needs_mask):
    # pred_ref:   (C, TS)       logits (source dtype) for one spatial tile
    # target_ref: (1, TS)       int32 labels
    # out_ref:    (3, C, 128)   f32 accumulator, resident across the spatial axis:
    #             row 0 = TP, row 1 = Q = sum(valid*p), row 2 = P = sum(onehot*valid)
    s = pl.program_id(2)

    @pl.when(s == 0)
    def _init():
        out_ref[...] = jnp.zeros_like(out_ref)

    n_chunks = ts // chunk
    class_ids = jax.lax.broadcasted_iota(jnp.int32, (num_classes, chunk), 0)
    if needs_mask:
        lane_ids = jax.lax.broadcasted_iota(jnp.int32, (1, chunk), 1)
        tile_start = (pl.program_id(1) * tiles_per_split + s) * ts

    def chunk_accumulate(off, carry):
        tp_acc, pv_acc, ov_acc = carry

        logits = pred_ref[:, pl.ds(off, chunk)].astype(jnp.float32)   # (C, chunk)
        tgt = target_ref[:, pl.ds(off, chunk)]                         # (1, chunk)

        if needs_mask:
            # Lanes beyond the true spatial extent hold garbage (pred was never
            # padded in HBM): zero the logits with a select (NOT a multiply, to
            # avoid NaN*0) and force the label to ignore_index.
            in_rng = (tile_start + off + lane_ids) < s_len             # (1, chunk)
            logits = jnp.where(in_rng, logits, 0.0)
            tgt = jnp.where(in_rng, tgt, ignore_index)

        # F.softmax(pred, dim=1): softmax over the class axis (axis 0 here);
        # (1, chunk) reciprocal + multiply instead of a (C, chunk) divide.
        m = jnp.max(logits, axis=0, keepdims=True)
        e = jnp.exp(logits - m)
        inv = pl.reciprocal(jnp.sum(e, axis=0, keepdims=True), approx=False)
        probs = e * inv                                                # (C, chunk)

        valid = (tgt != ignore_index).astype(jnp.float32)              # (1, chunk)
        if unclipped:
            # ignore_index >= num_classes -> ignored pixels match no class, so
            # onehot already carries the valid mask; no clamp, no extra multiplies.
            onehot = (tgt == class_ids).astype(jnp.float32)            # (C, chunk)
            ov = onehot
            tp = probs * onehot
        else:
            onehot = (jnp.clip(tgt, 0, num_classes - 1) == class_ids).astype(jnp.float32)
            ov = onehot * valid
            tp = probs * ov
        pv = probs * valid

        return (tp_acc + _fold128(tp, chunk),
                pv_acc + _fold128(pv, chunk),
                ov_acc + _fold128(ov, chunk))

    init = (out_ref[0], out_ref[1], out_ref[2])
    if n_chunks <= 8:
        carry = init
        for j in range(n_chunks):                      # short: fully unrolled
            carry = chunk_accumulate(j * chunk, carry)
    else:
        carry = jax.lax.fori_loop(
            0, n_chunks,
            lambda j, c: chunk_accumulate(pl.multiple_of(j * chunk, chunk), c),
            init, unroll=8)

    out_ref[0] = carry[0]
    out_ref[1] = carry[1]
    out_ref[2] = carry[2]


def mcc_loss_pallas(pred_nchw, target_nhw, *, smooth=1e-8, class_weight=None,
                    loss_weight=1.0, ignore_index=IGNORE_INDEX,
                    max_tile_lanes=None):
    """Equivalent to MCCLoss(smooth, 'mean', class_weight, loss_weight, ignore_index).forward."""
    N, C, H, W = pred_nchw.shape
    S = H * W
    itemsize = jnp.dtype(pred_nchw.dtype).itemsize

    # ---- tiling ------------------------------------------------------------
    # chunk = lanes per fused inner-loop step (bounds live vregs by C).
    if C <= 8:
        chunk = 512
    elif C <= 24:
        chunk = 256
    else:
        chunk = 128
    s128 = pl.cdiv(S, 128) * 128
    while chunk > 128 and chunk > s128:
        chunk //= 2
    if max_tile_lanes is not None:               # test hook: force small tiles
        while chunk > 128 and chunk > max_tile_lanes:
            chunk //= 2

    # TS = spatial lanes per grid step, sized from a ~2 MiB per-buffer budget
    # (safe for v5e/v6e/v7x scoped VMEM with the default double buffering).
    budget_bytes = 2 * 1024 * 1024
    budget_lanes = max(chunk, (budget_bytes // max(1, C * itemsize)) // chunk * chunk)
    s_cover = pl.cdiv(S, chunk) * chunk
    ts = min(budget_lanes, s_cover)
    if max_tile_lanes is not None:
        ts = min(ts, max(chunk, (max_tile_lanes // chunk) * chunk))
    num_s_tiles = pl.cdiv(s_cover, ts)

    # v7x: keep the second TensorCore busy (N==1 / odd N) by splitting the
    # spatial tiles across an extra "parallel" axis; no-op on v5e/v6e.
    split = 2 if (num_s_tiles >= 2 and num_s_tiles % 2 == 0) else 1
    tiles_per_split = num_s_tiles // split
    needs_mask = (num_s_tiles * ts) != S          # last tile extends past S

    pred = pred_nchw.reshape(N, C, S)             # no HBM padding copy
    target = target_nhw.reshape(N, 1, S).astype(jnp.int32)

    unclipped = ignore_index >= C                 # safe to skip clamp + valid muls

    kernel = partial(_mcc_stats_kernel, num_classes=C, chunk=chunk, ts=ts,
                     s_len=S, tiles_per_split=tiles_per_split,
                     ignore_index=ignore_index, unclipped=unclipped,
                     needs_mask=needs_mask)

    sp_idx = lambda n, p, s: (n, 0, p * tiles_per_split + s)

    stats = pl.pallas_call(
        kernel,
        out_shape=jax.ShapeDtypeStruct((N, split, 3, C, 128), jnp.float32),
        grid_spec=pltpu.PrefetchScalarGridSpec(
            num_scalar_prefetch=0,
            grid=(N, split, tiles_per_split),
            in_specs=[
                pl.BlockSpec((None, C, ts), sp_idx),     # pred tile (C, TS), src dtype
                pl.BlockSpec((None, 1, ts), sp_idx),     # target tile (1, TS)
            ],
            # Output block resident across the (last, "arbitrary") spatial axis.
            out_specs=pl.BlockSpec((None, None, 3, C, 128),
                                   lambda n, p, s: (n, p, 0, 0, 0)),
        ),
        compiler_params=pltpu.CompilerParams(
            dimension_semantics=("parallel", "parallel", "arbitrary")),
    )(pred, target)

    # ---- tiny JAX glue: one cross-lane reduce + scalar algebra ---------------
    sums = stats.sum(axis=(1, -1))                # (N, 3, C): split + lane reduce
    TP = sums[:, 0, :]                            # sum(valid * p * onehot)
    Q = sums[:, 1, :]                             # sum(valid * p)
    P = sums[:, 2, :]                             # sum(valid * onehot)
    V = jnp.sum(P, axis=1, keepdims=True)         # sum(valid)  (onehot sums to 1)
    FP = Q - TP
    FN = P - TP
    TN = jnp.maximum(V - Q - P + TP, 0.0)         # clamp tiny negative rounding

    numerator = TP * TN - FP * FN                 # (N, C)
    prod = (TP + FP) * (TP + FN) * (TN + FP) * (TN + FN)
    denominator = jnp.sqrt(jnp.maximum(prod, 0.0))
    mcc = numerator.sum(axis=0) / (denominator.sum(axis=0) + smooth)   # (C,)
    per_class = 1.0 - mcc                         # binary_mcc_loss per class

    if class_weight is not None:
        per_class = per_class * jnp.asarray(class_weight, jnp.float32)

    # torch loop skips class i == ignore_index (never triggers for small C).
    keep = (jnp.arange(C) != ignore_index).astype(jnp.float32)
    total = jnp.sum(per_class * keep) / C
    return loss_weight * total


def mcc_loss_ref(pred_nchw, target_nhw, *, smooth=1e-8, loss_weight=1.0,
                 ignore_index=IGNORE_INDEX):
    """Pure-JAX reference, mirroring the PyTorch code structure."""
    N, C, _, _ = pred_nchw.shape
    probs = jax.nn.softmax(pred_nchw.astype(jnp.float32), axis=1)
    onehot = jax.nn.one_hot(jnp.clip(target_nhw, 0, C - 1), C, axis=-1)
    valid = (target_nhw != ignore_index).astype(jnp.float32)

    total = 0.0
    for i in range(C):
        if i == ignore_index:
            continue
        p = probs[:, i].reshape(N, -1)
        t = onehot[..., i].reshape(N, -1)
        vm = valid.reshape(N, -1)
        TP = jnp.sum(p * t * vm, axis=1)
        FP = jnp.sum(p * (1.0 - t) * vm, axis=1)
        FN = jnp.sum((1.0 - p) * t * vm, axis=1)
        TN = jnp.sum((1.0 - p) * (1.0 - t) * vm, axis=1)
        num = jnp.multiply(TP, TN) - jnp.multiply(FP, FN)
        den = jnp.sqrt((TP + FP) * (TP + FN) * (TN + FP) * (TN + FN))
        mcc = num.sum() / (den.sum() + smooth)
        total = total + (1.0 - mcc)
    return loss_weight * total / C


if __name__ == "__main__":
    key = jax.random.PRNGKey(0)
    k_pred, k_tgt, k_ign = jax.random.split(key, 3)

    # Base case: N=2, C=4, 16x16 -> one 256-lane tile, no masking needed.
    N, C, H, W = 2, 4, 16, 16
    pred = jax.random.normal(k_pred, (N, C, H, W), dtype=jnp.float32)
    target = jax.random.randint(k_tgt, (N, H, W), 0, C, dtype=jnp.int32)
    ignore_mask = jax.random.bernoulli(k_ign, 0.1, (N, H, W))
    target = jnp.where(ignore_mask, IGNORE_INDEX, target)

    loss = jax.block_until_ready(mcc_loss_pallas(pred, target))
    ref = jax.block_until_ready(mcc_loss_ref(pred, target))
    assert jnp.isfinite(loss), "non-finite loss"
    assert jnp.allclose(loss, ref, rtol=1e-5, atol=1e-5), (loss, ref)

    # Multi-tile + dual-core split + out-of-range lane masking:
    # S=400, forced 128-lane tiles -> 4 spatial tiles -> split=2, last tile padded.
    k2p, k2t, k2i = jax.random.split(jax.random.PRNGKey(1), 3)
    H2, W2 = 20, 20
    pred2 = jax.random.normal(k2p, (N, C, H2, W2), dtype=jnp.float32)
    target2 = jax.random.randint(k2t, (N, H2, W2), 0, C, dtype=jnp.int32)
    target2 = jnp.where(jax.random.bernoulli(k2i, 0.1, (N, H2, W2)),
                        IGNORE_INDEX, target2)
    loss2 = jax.block_until_ready(mcc_loss_pallas(pred2, target2, max_tile_lanes=128))
    ref2 = jax.block_until_ready(mcc_loss_ref(pred2, target2))
    assert jnp.allclose(loss2, ref2, rtol=1e-5, atol=1e-5), (loss2, ref2)

    # Odd tile count (split=1) multi-step accumulation with remainder masking:
    # S=576, forced 256-lane tiles -> 3 tiles, last tile 64 lanes padded.
    k4p, k4t = jax.random.split(jax.random.PRNGKey(2))
    H4, W4 = 24, 24
    pred4 = jax.random.normal(k4p, (N, C, H4, W4), dtype=jnp.float32)
    target4 = jax.random.randint(k4t, (N, H4, W4), 0, C, dtype=jnp.int32)
    loss4 = jax.block_until_ready(mcc_loss_pallas(pred4, target4, max_tile_lanes=256))
    ref4 = jax.block_until_ready(mcc_loss_ref(pred4, target4))
    assert jnp.allclose(loss4, ref4, rtol=1e-5, atol=1e-5), (loss4, ref4)

    # bf16 input path (kernel DMAs bf16 and casts to f32 internally); the
    # reference sees the same bf16-rounded logits, so tolerances stay tight.
    pred3 = pred.astype(jnp.bfloat16)
    loss3 = jax.block_until_ready(mcc_loss_pallas(pred3, target))
    ref3 = jax.block_until_ready(mcc_loss_ref(pred3.astype(jnp.float32), target))
    assert jnp.allclose(loss3, ref3, rtol=1e-4, atol=1e-4), (loss3, ref3)

    print("KERNEL_OK")
</pallas_src>

<mosaic_0001>
module attributes {stable_mosaic.version = 11 : i64} {
  func.func @_mcc_stats_kernel(%arg0: i32, %arg1: i32, %arg2: i32, %arg3: memref<1x4x256xf32, #tpu.memory_space<vmem>>, %arg4: memref<1x1x256xi32, #tpu.memory_space<vmem>>, %arg5: memref<1x1x3x4x128xf32, #tpu.memory_space<vmem>>) attributes {dimension_semantics = [#tpu.dimension_semantics<parallel>, #tpu.dimension_semantics<parallel>, #tpu.dimension_semantics<arbitrary>], iteration_bounds = array<i64: 2, 1, 1>, scalar_prefetch = 0 : i64, scratch_operands = 0 : i64, tpu.core_type = #tpu.core_type<tc>, window_params = [{transform_indices = @transform_0, window_bounds = array<i64: 1, 4, 256>}, {transform_indices = @transform_1, window_bounds = array<i64: 1, 1, 256>}, {transform_indices = @transform_2, window_bounds = array<i64: 1, 1, 3, 4, 128>}]} {
    %c0_i32 = arith.constant 0 : i32
    %0 = arith.cmpi eq, %arg2, %c0_i32 : i32
    %1 = arith.extui %0 : i1 to i32
    %c0_i32_0 = arith.constant 0 : i32
    %2 = arith.cmpi ne, %1, %c0_i32_0 : i32
    scf.if %2 {
      %cst_35 = arith.constant 0.000000e+00 : f32
      %56 = vector.broadcast %cst_35 : f32 to vector<3x4x128xf32>
      %c0_36 = arith.constant 0 : index
      %c0_37 = arith.constant 0 : index
      %c0_38 = arith.constant 0 : index
      %c0_39 = arith.constant 0 : index
      %c0_40 = arith.constant 0 : index
      %57 = vector.load %arg5[%c0_36, %c0_37, %c0_38, %c0_39, %c0_40] : memref<1x1x3x4x128xf32, #tpu.memory_space<vmem>>, vector<1x1x3x4x128xf32>
      %58 = vector.shape_cast %57 : vector<1x1x3x4x128xf32> to vector<3x4x128xf32>
      %59 = vector.shape_cast %56 : vector<3x4x128xf32> to vector<1x1x3x4x128xf32>
      tpu.vector_store %arg5[%c0_36, %c0_37, %c0_38, %c0_39, %c0_40], %59 {strides = array<i32>} : memref<1x1x3x4x128xf32, #tpu.memory_space<vmem>>, vector<1x1x3x4x128xf32>,
    } else {
    }
    %3 = tpu.iota {dimensions = array<i32: 0>} : vector<4x256xi32>
    %c0 = arith.constant 0 : index
    %c0_1 = arith.constant 0 : index
    %c0_2 = arith.constant 0 : index
    %c0_3 = arith.constant 0 : index
    %c0_4 = arith.constant 0 : index
    %4 = vector.load %arg5[%c0, %c0_1, %c0_2, %c0_3, %c0_4] : memref<1x1x3x4x128xf32, #tpu.memory_space<vmem>>, vector<1x1x1x4x128xf32>
    %5 = vector.shape_cast %4 : vector<1x1x1x4x128xf32> to vector<4x128xf32>
    %c0_5 = arith.constant 0 : index
    %c0_6 = arith.constant 0 : index
    %c1 = arith.constant 1 : index
    %c0_7 = arith.constant 0 : index
    %c0_8 = arith.constant 0 : index
    %6 = vector.load %arg5[%c0_5, %c0_6, %c1, %c0_7, %c0_8] : memref<1x1x3x4x128xf32, #tpu.memory_space<vmem>>, vector<1x1x1x4x128xf32>
    %7 = vector.shape_cast %6 : vector<1x1x1x4x128xf32> to vector<4x128xf32>
    %c0_9 = arith.constant 0 : index
    %c0_10 = arith.constant 0 : index
    %c2 = arith.constant 2 : index
    %c0_11 = arith.constant 0 : index
    %c0_12 = arith.constant 0 : index
    %8 = vector.load %arg5[%c0_9, %c0_10, %c2, %c0_11, %c0_12] : memref<1x1x3x4x128xf32, #tpu.memory_space<vmem>>, vector<1x1x1x4x128xf32>
    %9 = vector.shape_cast %8 : vector<1x1x1x4x128xf32> to vector<4x128xf32>
    %c0_13 = arith.constant 0 : index
    %c0_14 = arith.constant 0 : index
    %c0_15 = arith.constant 0 : index
    %10 = vector.load %arg3[%c0_13, %c0_14, %c0_15] : memref<1x4x256xf32, #tpu.memory_space<vmem>>, vector<1x4x256xf32>
    %11 = vector.shape_cast %10 : vector<1x4x256xf32> to vector<4x256xf32>
    %c0_16 = arith.constant 0 : index
    %c0_17 = arith.constant 0 : index
    %c0_18 = arith.constant 0 : index
    %12 = vector.load %arg4[%c0_16, %c0_17, %c0_18] : memref<1x1x256xi32, #tpu.memory_space<vmem>>, vector<1x1x256xi32>
    %13 = vector.shape_cast %12 : vector<1x1x256xi32> to vector<1x256xi32>
    %cst = arith.constant dense<0xFF800000> : vector<256xf32>
    %14 = vector.multi_reduction <maximumf>, %11, %cst [0] : vector<4x256xf32> to vector<256xf32>
    %15 = vector.shape_cast %14 : vector<256xf32> to vector<1x256xf32>
    %16 = vector.broadcast %15 : vector<1x256xf32> to vector<4x256xf32>
    %17 = arith.subf %11, %16 : vector<4x256xf32>
    %18 = math.exp %17 : vector<4x256xf32>
    %cst_19 = arith.constant dense<0.000000e+00> : vector<256xf32>
    %19 = vector.multi_reduction <add>, %18, %cst_19 [0] : vector<4x256xf32> to vector<256xf32>
    %20 = vector.shape_cast %19 : vector<256xf32> to vector<1x256xf32>
    %21 = tpu.reciprocal %20 : vector<1x256xf32> -> vector<1x256xf32>
    %22 = vector.broadcast %21 : vector<1x256xf32> to vector<4x256xf32>
    %23 = arith.mulf %18, %22 : vector<4x256xf32>
    %c255_i32 = arith.constant 255 : i32
    %24 = vector.broadcast %c255_i32 : i32 to vector<1x256xi32>
    %25 = arith.cmpi ne, %13, %24 : vector<1x256xi32>
    %26 = arith.extui %25 : vector<1x256xi1> to vector<1x256xi32>
    %27 = arith.sitofp %26 : vector<1x256xi32> to vector<1x256xf32>
    %28 = vector.broadcast %13 : vector<1x256xi32> to vector<4x256xi32>
    %29 = arith.cmpi eq, %28, %3 : vector<4x256xi32>
    %30 = arith.extui %29 : vector<4x256xi1> to vector<4x256xi32>
    %31 = arith.sitofp %30 : vector<4x256xi32> to vector<4x256xf32>
    %32 = arith.mulf %23, %31 : vector<4x256xf32>
    %33 = vector.broadcast %27 : vector<1x256xf32> to vector<4x256xf32>
    %34 = arith.mulf %23, %33 : vector<4x256xf32>
    %35 = vector.extract_strided_slice %32 {offsets = [0, 0], sizes = [4, 128], strides = [1, 1]} : vector<4x256xf32> to vector<4x128xf32>
    %36 = vector.extract_strided_slice %32 {offsets = [0, 128], sizes = [4, 128], strides = [1, 1]} : vector<4x256xf32> to vector<4x128xf32>
    %37 = arith.addf %35, %36 : vector<4x128xf32>
    %38 = arith.addf %5, %37 : vector<4x128xf32>
    %39 = vector.extract_strided_slice %34 {offsets = [0, 0], sizes = [4, 128], strides = [1, 1]} : vector<4x256xf32> to vector<4x128xf32>
    %40 = vector.extract_strided_slice %34 {offsets = [0, 128], sizes = [4, 128], strides = [1, 1]} : vector<4x256xf32> to vector<4x128xf32>
    %41 = arith.addf %39, %40 : vector<4x128xf32>
    %42 = arith.addf %7, %41 : vector<4x128xf32>
    %43 = vector.extract_strided_slice %31 {offsets = [0, 0], sizes = [4, 128], strides = [1, 1]} : vector<4x256xf32> to vector<4x128xf32>
    %44 = vector.extract_strided_slice %31 {offsets = [0, 128], sizes = [4, 128], strides = [1, 1]} : vector<4x256xf32> to vector<4x128xf32>
    %45 = arith.addf %43, %44 : vector<4x128xf32>
    %46 = arith.addf %9, %45 : vector<4x128xf32>
    %c0_20 = arith.constant 0 : index
    %c0_21 = arith.constant 0 : index
    %c0_22 = arith.constant 0 : index
    %c0_23 = arith.constant 0 : index
    %c0_24 = arith.constant 0 : index
    %47 = vector.load %arg5[%c0_20, %c0_21, %c0_22, %c0_23, %c0_24] : memref<1x1x3x4x128xf32, #tpu.memory_space<vmem>>, vector<1x1x1x4x128xf32>
    %48 = vector.shape_cast %47 : vector<1x1x1x4x128xf32> to vector<4x128xf32>
    %49 = vector.shape_cast %38 : vector<4x128xf32> to vector<1x1x1x4x128xf32>
    tpu.vector_store %arg5[%c0_20, %c0_21, %c0_22, %c0_23, %c0_24], %49 {strides = array<i32>} : memref<1x1x3x4x128xf32, #tpu.memory_space<vmem>>, vector<1x1x1x4x128xf32>,
    %c0_25 = arith.constant 0 : index
    %c0_26 = arith.constant 0 : index
    %c1_27 = arith.constant 1 : index
    %c0_28 = arith.constant 0 : index
    %c0_29 = arith.constant 0 : index
    %50 = vector.load %arg5[%c0_25, %c0_26, %c1_27, %c0_28, %c0_29] : memref<1x1x3x4x128xf32, #tpu.memory_space<vmem>>, vector<1x1x1x4x128xf32>
    %51 = vector.shape_cast %50 : vector<1x1x1x4x128xf32> to vector<4x128xf32>
    %52 = vector.shape_cast %42 : vector<4x128xf32> to vector<1x1x1x4x128xf32>
    tpu.vector_store %arg5[%c0_25, %c0_26, %c1_27, %c0_28, %c0_29], %52 {strides = array<i32>} : memref<1x1x3x4x128xf32, #tpu.memory_space<vmem>>, vector<1x1x1x4x128xf32>,
    %c0_30 = arith.constant 0 : index
    %c0_31 = arith.constant 0 : index
    %c2_32 = arith.constant 2 : index
    %c0_33 = arith.constant 0 : index
    %c0_34 = arith.constant 0 : index
    %53 = vector.load %arg5[%c0_30, %c0_31, %c2_32, %c0_33, %c0_34] : memref<1x1x3x4x128xf32, #tpu.memory_space<vmem>>, vector<1x1x1x4x128xf32>
    %54 = vector.shape_cast %53 : vector<1x1x1x4x128xf32> to vector<4x128xf32>
    %55 = vector.shape_cast %46 : vector<4x128xf32> to vector<1x1x1x4x128xf32>
    tpu.vector_store %arg5[%c0_30, %c0_31, %c2_32, %c0_33, %c0_34], %55 {strides = array<i32>} : memref<1x1x3x4x128xf32, #tpu.memory_space<vmem>>, vector<1x1x1x4x128xf32>,
    return
  }
  func.func @transform_0(%arg0: i32, %arg1: i32, %arg2: i32) -> (i32, i32, i32) {
    %c1_i32 = arith.constant 1 : i32
    %0 = arith.muli %arg1, %c1_i32 : i32
    %1 = arith.addi %0, %arg2 : i32
    %c0_i32 = arith.constant 0 : i32
    %c0_i32_0 = arith.constant 0 : i32
    return %arg0, %c0_i32, %1 : i32, i32, i32
  }
  func.func @transform_1(%arg0: i32, %arg1: i32, %arg2: i32) -> (i32, i32, i32) {
    %c1_i32 = arith.constant 1 : i32
    %0 = arith.muli %arg1, %c1_i32 : i32
    %1 = arith.addi %0, %arg2 : i32
    %c0_i32 = arith.constant 0 : i32
    %c0_i32_0 = arith.constant 0 : i32
    return %arg0, %c0_i32, %1 : i32, i32, i32
  }
  func.func @transform_2(%arg0: i32, %arg1: i32, %arg2: i32) -> (i32, i32, i32, i32, i32) {
    %c0_i32 = arith.constant 0 : i32
    %c0_i32_0 = arith.constant 0 : i32
    %c0_i32_1 = arith.constant 0 : i32
    %c0_i32_2 = arith.constant 0 : i32
    return %arg0, %arg1, %c0_i32, %c0_i32_0, %c0_i32_1 : i32, i32, i32, i32, i32
  }
}

</mosaic_0001>

<bundles_post_ra>
// kernel: tpu_custom_call.1
= control target key start
LH: loop header
LB: loop body
LE: loop exit
PB: predicated region body
PF: predicated region fallthrough
CT: control target
= control target key end

     0   :  { %7 = vsyncpa [#allocation3], 0  ;;  %s992_s0 = inlined_call_operand.hbm [shape: f32[2,4,256], index: 0, kind: input, shape index: {}]   ;;  %s993_s1 = inlined_call_operand.hbm [shape: s32[2,1,256], index: 1, kind: input, shape index: {}]   ;;  %s994_s2 = inlined_call_operand.hbm [shape: f32[2,1,3,4,128], index: 2, kind: output, shape index: {}]  }
   0x1   :  { %9 = vsyncpa [#allocation3 + $0x1], 0 }
   0x2   :  { %10 = vsyncpa [#allocation6], 0 }
   0x3   :  { %12 = vsyncpa [#allocation6 + $0x1], 0 }
   0x4   :  { %13 = vsyncpa [#allocation4], 0 }
   0x5   :  { %15 = vsyncpa [#allocation4 + $0x1], 0  ;;  %s758_s9 = smov 0   ;;  %s760_s10 = smov 0  }
   0x6   :  { %s762_s11 = smov 0   ;;  %s764_s12 = smov 0  }
   0x7   :  { %s766_s13 = smov 0   ;;  %s768_s14 = smov 0  }
   0x8 LB: > { %s485_s15 = sadd.s32 4294967295, %s735_s14   ;;  %s486_s16 = sadd.s32 4294967294, %s735_s14   ;;  %s735_s14 = sphi %s768_s14, %s21_s14   ;;  %s731_s13 = sphi %s766_s13, %s1014_s13   ;;  %s727_s12 = sphi %s764_s12, %s1013_s12   ;;  %s723_s11 = sphi %s762_s11, %s1012_s11   ;;  %s719_s10 = sphi %s760_s10, %s1011_s10   ;;  %s715_s9 = sphi %s758_s9, %s1010_s9  }
   0x9   : > { %s40_s17 = sadd.s32 1, %s731_s13  ;;  %s51_s18 = sadd.s32 1, %s723_s11 }
   0xa   : > { %p42_p0 = scmp.ge.s32.totalorder %s40_s17, 2  ;;  %p58_p1 = scmp.ne.s32.totalorder %s723_s11, %s719_s10 }
   0xb   : > { %p59_p2 = scmp.eq.s32.totalorder %s735_s14, 0  ;;  %p64_p3 = scmp.ne.s32.totalorder %s719_s10, %s715_s9 }
   0xc   : > { %s1016_s17 = smov (%p42_p0, %s40_s17), 0  ;;  %p65_p5 = scmp.eq.s32.totalorder %s485_s15, 0 }
   0xd   : > { %p799_p4 = por %p59_p2, %p58_p1  ;;  %s46_s20 = ssub.s32 %s731_s13, %s1016_s17 }
   0xe   : > { %p120_p6 = scmp.eq.s32.totalorder %s485_s15, 1  ;;  %p49_p7 = scmp.eq.s32.totalorder %s46_s20, 0 }
   0xf   : > { %p805_p8 = por %p65_p5, %p64_p3  ;;  %p126_p10 = scmp.eq.s32.totalorder %s486_s16, 1 }
  0x10   : > { %p809_p9 = por %p120_p6, %p58_p1  ;;  %p529_p13 = scmp.lt.s32.totalorder %s735_s14, 2 }
  0x11   : > { %s998_s21 = scalar_select %p805_p8, 1, 0 }
  0x12   : > { %s999_s22 = scalar_select %p809_p9, 1, 0 }
  0x13   : > { %s814_s23 = scalar_select %p49_p7, %s723_s11, %s51_s18  }
  0x14   : > { %p816_p11 = por %p126_p10, %p64_p3  ;;  %s823_s25 = sand.u32 1, %s723_s11  }
  0x15   : > { %s489_s26 = sshll.u32 %s823_s25, 3  ;;  %s508_s27 = sshll.u32 %s731_s13, 7 }
  0x16   : > { %s1000_s24 = scalar_select %p816_p11, 1, 0 }
  0x17   : > { %s830_s30 = scalar_lea.hbm %s992_s0, %s508_s27  ;;  %s150_s3 = scalar_lea.vmem [#allocation2], %s489_s26 }
  0x18   : > { %s161_s4 = sshll.u32 %s150_s3, 4  ;;  %p836_p0 = pnand %p529_p13, %p799_p4  ;;  %s832_s4 = int_to_ptr.vmem [resolvable:$true] %s161_s4 }
  0x19   : > { %s147_s6 = scalar_lea.sflag [#allocation3], %s823_s25  ;;  %s589_s7 = scalar_lea.hbm %s830_s30, 128 }
  0x1a   : > { %p590_p3 = scmp.ne.s32.totalorder %s830_s30, %s589_s7  ;;  %p591_p5 = pneg %p836_p0 }
  0x1b   : > { %s594_s16 = scalar_lea.hbm %s992_s0, 256  ;;  %p595_p4 = scmp.lt.u32.totalorder %s830_s30, %s992_s0 }
  0x1c   : > { %p592_p6 = pnand %p591_p5, %p590_p3  ;;  %p596_p10 = scmp.lt.u32.totalorder %s594_s16, %s589_s7 }
  0x1d   : > { %p598_p12 = scmp.lt.u32.totalorder %s589_s7, %s830_s30 }
  0x1e   : > { %p593_p7 = pneg %p592_p6  ;;  %p597_p13 = por %p596_p10, %p595_p4 }
  0x20   : > { %p599_p1 = por %p598_p12, %p597_p13 }
  0x22   : > { %p600_p2 = pnand %p599_p1, %p593_p7 }
  0x24   : > { %603 = shalt.err (!%p600_p2)
}
  0x25   : > { %s604_s20 = scalar_lea.vmem %s832_s4, 128  ;;  %s737_s26 = smov [#allocation2]  }
  0x26   : > { %p605_p3 = scmp.ne.s32.totalorder %s832_s4, %s604_s20  ;;  %s609_s27 = sshll.u32 %s737_s26, 4  ;;  %s610_s27 = int_to_ptr.vmem [resolvable:$false] %s609_s27 }
  0x27   : > { %s611_s28 = scalar_lea.vmem %s610_s27, 256  ;;  %p612_p9 = scmp.lt.s32.totalorder %s832_s4, %s610_s27 }
  0x28   : > { %p607_p6 = pnand %p605_p3, %p591_p5  ;;  %p613_p4 = scmp.lt.s32.totalorder %s611_s28, %s604_s20 }
  0x2a   : > { %p608_p11 = pneg %p607_p6  ;;  %p614_p10 = por %p613_p4, %p612_p9 }
  0x2c   : > { %p615_p12 = pnand %p614_p10, %p608_p11 }
  0x2e   : > { %618 = shalt.err (!%p615_p12)
}
  0x2f   : > { %521 = dma.hbm_to_vmem [thread:$0]  (!%p836_p0), %s830_s30, 128, %s832_s4, %s147_s6  }
  0x30   : > { %p1002_p1 = scmp.lt.s32.totalorder %s735_s14, 3  ;;  %p1003_p2 = scmp.ge.s32.totalorder %s735_s14, 1 }
  0x31   : > { %s492_s3 = sshll.u32 %s823_s25, 1  ;;  %s509_s7 = sshll.u32 %s731_s13, 5 }
  0x32   : > { %p872_p7 = pnand %p1003_p2, %p1002_p1  ;;  %s881_s16 = scalar_lea.hbm %s993_s1, %s509_s7 }
  0x33   : > { %s172_s18 = scalar_lea.vmem [#allocation5], %s492_s3  ;;  %s169_s30 = scalar_lea.sflag [#allocation6], %s823_s25 }
  0x34   : > { %s1004_s29 = scalar_select %p872_p7, 1, 0 }
  0x35   : > { %s183_s19 = sshll.u32 %s172_s18, 4  ;;  %s619_s4 = scalar_lea.hbm %s881_s16, 32  ;;  %s184_s19 = int_to_ptr.vmem [resolvable:$true] %s183_s19 }
  0x36   : > { %p620_p9 = scmp.ne.s32.totalorder %s881_s16, %s619_s4  ;;  %s624_s26 = scalar_lea.hbm %s993_s1, 64 }
  0x37   : > { %p625_p3 = scmp.lt.u32.totalorder %s881_s16, %s993_s1  ;;  %p626_p6 = scmp.lt.u32.totalorder %s624_s26, %s619_s4 }
  0x38   : > { %p622_p11 = pnand %p620_p9, %p591_p5  ;;  %p628_p10 = scmp.lt.u32.totalorder %s619_s4, %s881_s16 }
  0x39   : > { %p627_p4 = por %p626_p6, %p625_p3 }
  0x3a   : > { %p623_p13 = pneg %p622_p11 }
  0x3b   : > { %p629_p12 = por %p628_p10, %p627_p4 }
  0x3d   : > { %p630_p1 = pnand %p629_p12, %p623_p13 }
  0x3f   : > { %633 = shalt.err (!%p630_p1)
}
  0x40   : > { %s634_s25 = scalar_lea.vmem %s184_s19, 32  ;;  %s738_s3 = smov [#allocation5]  }
  0x41   : > { %p635_p2 = scmp.ne.s32.totalorder %s184_s19, %s634_s25  ;;  %s639_s7 = sshll.u32 %s738_s3, 4  ;;  %s640_s7 = int_to_ptr.vmem [resolvable:$false] %s639_s7 }
  0x42   : > { %s641_s8 = scalar_lea.vmem %s640_s7, 64  ;;  %p642_p8 = scmp.lt.s32.totalorder %s184_s19, %s640_s7 }
  0x43   : > { %p637_p9 = pnand %p635_p2, %p591_p5  ;;  %p643_p7 = scmp.lt.s32.totalorder %s641_s8, %s634_s25 }
  0x45   : > { %p638_p11 = pneg %p637_p9  ;;  %p644_p3 = por %p643_p7, %p642_p8 }
  0x47   : > { %p645_p6 = pnand %p644_p3, %p638_p11 }
  0x49   : > { %648 = shalt.err (!%p645_p6)
}
  0x4a   : > { %524 = dma.hbm_to_vmem [thread:$0]  (!%p836_p0), %s881_s16, 32, %s184_s19, %s169_s30  }
  0x4b   : > { %p1005_p13 = scmp.ne.s32.totalorder %s1004_s29, 0 }
  0x4c   : > { %s906_s15 = sand.u32 (!%p1005_p13), 1, %s719_s10   ;;  %p1006_p5 = scmp.ne.s32.totalorder (!%p1005_p13), %s998_s21, 0 }
  0x4d   : > { %192 = sbr.rel (%p1005_p13) target bundleno = 174 (0xae), region = 28  ;;  %s496_s18 = sshll.u32 (!%p1005_p13), %s906_s15, 3 }
  0x4e   : > { %s195_s4 = scalar_lea.sflag (!%p1005_p13), [#allocation3], %s906_s15  ;;  %s198_s6 = scalar_lea.vmem (!%p1005_p13), [#allocation2], %s496_s18 }
  0x54   : > { %702 = dma.done.wait (%p1006_p5), %s195_s4, 128  }
  0x55   : > { %704 = vsyncadd (%p1006_p5), %s195_s4, 4294967168  ;;  %s497_s5 = sshll.u32 %s906_s15, 1  ;;  %s204_s29 = scalar_lea.sflag [#allocation6], %s906_s15 }
  0x56   : > { %s207_s16 = scalar_lea.vmem [#allocation5], %s497_s5 }
  0x57   : > { %706 = dma.done.wait (%p1006_p5), %s204_s29, 32  }
  0x58   : > { %708 = vsyncadd (%p1006_p5), %s204_s29, 4294967264  ;;  %s510_s19 = smul.u32 12, %s906_s15  ;;  %v244_v0 = vlaneseq  ;;  %v739_v2 = vmov 0.0   ;;  %vm256_vm0 = vcmask 1043456   ;;  %v251_v5 = vld [vmem:[%s198_s6] sm:$0xff]  ;;  %p1007_p0 = scmp.ne.s32.totalorder %s999_s22, 0 }
  0x59   : > { %v252_v6 = vld [vmem:[%s207_s16] sm:$0x3]  ;;  %v254_v7 = vcombine.high %v251_v5, %v251_v5  ;;  %v257_v8 = vsel %vm256_vm0, %v251_v5, -inf  ;;  %s511_s21 = smul.u32 192, %s727_s12  ;;  %s352_s12 = scalar_lea.sflag [#allocation4], %s906_s15 }
  0x5a   : > { %v245_v1 = vshrl.u32 %v244_v0, 7  ;;  %s921_s30 = scalar_lea.vmem [#allocation7], %s510_s19  ;;  %v258_v11 = vrot.slane %v257_v8, 4  ;;  %vm302_vm3 = vcmp.ne.s32.totalorder %v252_v6, 255  ;;  %s740_s3 = smov [#allocation7]  }
  0x5b   : > { %241 = vst [vmem:[%s921_s30] sm:$0xf] %v739_v2  ;;  %242 = vst [vmem:[%s921_s30 + $0x4] sm:$0xf] %v739_v2  ;;  %v264_v12 = vsel %vm256_vm0, %v254_v7, -inf  ;;  %v500_v48 = vsel %vm302_vm3, 1.0, %v739_v2  ;;  %s367_s20 = sshll.u32 %s921_s30, 4  ;;  %s939_s28 = scalar_lea.hbm %s994_s2, %s511_s21  ;;  %s941_s20 = int_to_ptr.vmem [resolvable:$true] %s367_s20 }
  0x5c   : > { %243 = vst [vmem:[%s921_s30 + $0x8] sm:$0xf] %v739_v2  ;;  %v307_v3 = vsub.s32 0, %v245_v1  ;;  %v311_v4 = vsub.s32 1, %v245_v1  ;;  %v259_v13 = vmax.f32 %v257_v8, %v258_v11  ;;  %v265_v14 = vrot.slane %v264_v12, 4  ;;  %s649_s25 = scalar_lea.vmem %s941_s20, 192 }
  0x5d   : > { %p650_p8 = scmp.ne.s32.totalorder %s941_s20, %s649_s25  ;;  %s653_s7 = sshll.u32 %s740_s3, 4  ;;  %s654_s7 = int_to_ptr.vmem [resolvable:$false] %s653_s7 }
  0x5e   : > { %v308_v9 = vrot.slane %v252_v6, %v307_v3  ;;  %v312_v10 = vrot.slane %v252_v6, %v311_v4  ;;  %v260_v19 = vrot.slane %v259_v13, 2  ;;  %v266_v20 = vmax.f32 %v264_v12, %v265_v14  ;;  %s655_s8 = scalar_lea.vmem %s654_s7, 384  ;;  %p656_p10 = scmp.lt.s32.totalorder %s941_s20, %s654_s7 }
  0x5f   : > { %v328_v49 = vrot.slane %v500_v48, %v307_v3  ;;  %v332_v50 = vrot.slane %v500_v48, %v311_v4  ;;  %p651_p7 = pnand %p650_p8, %p1007_p0  ;;  %p657_p12 = scmp.lt.s32.totalorder %s655_s8, %s649_s25 }
  0x60   : > { %vm313_vm1 = vcmp.eq.s32.totalorder %v308_v9, %v245_v1  ;;  %vm314_vm2 = vcmp.eq.s32.totalorder %v312_v10, %v245_v1  ;;  %v261_v22 = vmax.f32 %v259_v13, %v260_v19  ;;  %v267_v23 = vrot.slane %v266_v20, 2 }
  0x61   : > { %v501_v15 = vsel %vm313_vm1, 1.0, %v739_v2  ;;  %v502_v16 = vsel %vm314_vm2, 1.0, %v739_v2  ;;  %v333_v55 = vcombine.low %v328_v49, %v332_v50  ;;  %p652_p4 = pneg %p651_p7  ;;  %p658_p1 = por %p657_p12, %p656_p10 }
  0x62   : > { %v346_v18 = vadd.f32 %v502_v16, %v501_v15  ;;  %v262_v24 = vrot.slane %v261_v22, 1  ;;  %v268_v25 = vmax.f32 %v266_v20, %v267_v23  ;;  %v321_v54 = vcombine.low %v501_v15, %v502_v16  ;;  %v246_v61 = vld [vmem:[%s921_s30] sm:$0xf]  ;;  %v498_v62 = vld [vmem:[%s921_s30 + $0x4] sm:$0xf] }
  0x63   : > { %v499_v17 = vld [vmem:[%s921_s30 + $0x8] sm:$0xf]  ;;  %p659_p2 = pnand %p658_p1, %p652_p4 }
  0x64   : > { %v347_v21 = vadd.f32 %v499_v17, %v346_v18  ;;  %v263_v26 = vmax.f32 %v261_v22, %v262_v24  ;;  %v269_v27 = vrot.slane %v268_v25, 1 }
  0x66   : > { %504 = vst [vmem:[%s921_s30 + $0x8] sm:$0xf] %v347_v21  ;;  %v270_v28 = vmax.f32 %v268_v25, %v269_v27 }
  0x68   : > { %v273_v29 = vcombine.low %v263_v26, %v270_v28 }
  0x6a   : > { %v275_v30 = vsub.f32 %v251_v5, %v273_v29 }
  0x6c   : > { %v276_v31 = vmul.f32 1.442695, %v275_v30 }
  0x6e   : > { %583 = vpow2.f32 %v276_v31 }
  0x78   : > { %v584_v32 = vpop.eup %583 }
  0x79   : > { %v279_v33 = vcombine.high %v584_v32, %v584_v32  ;;  %v281_v34 = vsel %vm256_vm0, %v584_v32, 0.0 }
  0x7a   : > { %v282_v35 = vrot.slane %v281_v34, 4 }
  0x7b   : > { %v288_v36 = vsel %vm256_vm0, %v279_v33, 0.0 }
  0x7c   : > { %v283_v37 = vadd.f32 %v282_v35, %v281_v34  ;;  %v289_v38 = vrot.slane %v288_v36, 4 }
  0x7e   : > { %v284_v39 = vrot.slane %v283_v37, 2  ;;  %v290_v40 = vadd.f32 %v289_v38, %v288_v36 }
  0x80   : > { %v285_v41 = vadd.f32 %v284_v39, %v283_v37  ;;  %v291_v42 = vrot.slane %v290_v40, 2 }
  0x82   : > { %v286_v43 = vrot.slane %v285_v41, 1  ;;  %v292_v44 = vadd.f32 %v291_v42, %v290_v40 }
  0x84   : > { %v287_v45 = vadd.f32 %v286_v43, %v285_v41  ;;  %v293_v46 = vrot.slane %v292_v44, 1 }
  0x86   : > { %v294_v47 = vadd.f32 %v293_v46, %v292_v44  ;;  %585 = vrcp.f32 %v287_v45 }
  0x88   : > { %587 = vrcp.f32 %v294_v47 }
  0x90   : > { %v586_v51 = vpop.eup %585 }
  0x92   : > { %v588_v52 = vpop.eup %587 }
  0x93   : > { %v299_v53 = vcombine.low %v586_v51, %v588_v52 }
  0x95   : > { %v301_v56 = vmul.f32 %v584_v32, %v299_v53 }
  0x97   : > { %v323_v57 = vmul.f32 %v321_v54, %v301_v56  ;;  %v335_v58 = vmul.f32 %v333_v55, %v301_v56 }
  0x99   : > { %v337_v59 = vrot.slane %v323_v57, 4  ;;  %v342_v60 = vrot.slane %v335_v58, 4 }
  0x9b   : > { %v339_v63 = vadd.f32 %v337_v59, %v323_v57  ;;  %v344_v0 = vadd.f32 %v342_v60, %v335_v58 }
  0x9d   : > { %v340_v1 = vadd.f32 %v339_v63, %v246_v61  ;;  %v345_v2 = vadd.f32 %v498_v62, %v344_v0 }
  0x9f   : > { %348 = vst [vmem:[%s921_s30] sm:$0xf] %v340_v1  ;;  %503 = vst [vmem:[%s921_s30 + $0x4] sm:$0xf] %v345_v2 }
  0xa0   : > { %662 = shalt.err (!%p659_p2)
}
  0xa1   : > { %s663_s18 = scalar_lea.hbm %s939_s28, 192  ;;  %s667_s5 = scalar_lea.hbm %s994_s2, 384 }
  0xa2   : > { %p664_p9 = scmp.ne.s32.totalorder %s939_s28, %s663_s18  ;;  %p668_p6 = scmp.lt.u32.totalorder %s939_s28, %s994_s2 }
  0xa3   : > { %p669_p13 = scmp.lt.u32.totalorder %s667_s5, %s663_s18  ;;  %p671_p8 = scmp.lt.u32.totalorder %s663_s18, %s939_s28 }
  0xa4   : > { %p665_p11 = pnand %p664_p9, %p1007_p0 }
  0xa5   : > { %p670_p5 = por %p669_p13, %p668_p6 }
  0xa6   : > { %p666_p3 = pneg %p665_p11 }
  0xa7   : > { %p672_p7 = por %p671_p8, %p670_p5 }
  0xa9   : > { %p673_p4 = pnand %p672_p7, %p666_p3 }
  0xab   : > { %676 = shalt.err (!%p673_p4)
}
  0xac   : > { %s741_s19 = smov 64   ;;  %s742_s30 = smov 4  }
  0xad   : > { %516 = dma.vmem_to_hbm [thread:$0]  (%p1007_p0), %s941_s20, 192, %s939_s28, %s352_s12, %s741_s19, %s741_s19, %s742_s30  }
  0xae PF: > { %s382_s21 = sand.u32 1, %s715_s9   ;;  %p1008_p10 = scmp.ne.s32.totalorder %s1000_s24, 0 }
  0xaf   : > { %p1009_p12 = scmp.ge.s32.totalorder %s735_s14, 2  ;;  %s383_s26 = scalar_lea.sflag [#allocation4], %s382_s21 }
  0xb1   : > { %p526_p1 = pnand %p1009_p12, %p1008_p10 }
  0xb3   : > { %710 = dma.done.wait (!%p526_p1), %s383_s26, 192  }
  0xb4   : > { %712 = vsyncadd (!%p526_p1), %s383_s26, 4294967104  ;;  %s21_s14 = sadd.s32 1, %s735_s14   ;;  %s1010_s9 = smov %s719_s10 }
  0xb5   : > { %p18_p2 = scmp.ge.s32.totalorder %s21_s14, 4   ;;  %s1011_s10 = smov %s723_s11 }
  0xb6   : > { %s1012_s11 = smov %s814_s23  ;;  %s1013_s12 = smov %s731_s13 }
  0xb7   : > { %s1014_s13 = smov %s1016_s17  ;;  %20 = sbr.rel (!%p18_p2) target bundleno = 8 (0x8), region = 92 }
  0xbe   :  { %388 = vsyncpa [#allocation3], 1 }
  0xbf   :  { %390 = vsyncpa [#allocation3 + $0x1], 1 }
  0xc0   :  { %391 = vsyncpa [#allocation6], 1 }
  0xc1   :  { %393 = vsyncpa [#allocation6 + $0x1], 1 }
  0xc2   :  { %394 = vsyncpa [#allocation4], 1 }
  0xc3   :  { %396 = vsyncpa [#allocation4 + $0x1], 1 }

</bundles_post_ra>
